<compile_context>
chip_gen: v7x
topology: tpu7x:2x2x1
jax: 0.10.0
libtpu: 0.0.40
codegen_flags: <defaults>
</compile_context>

<pallas_src>
import functools

import jax
import jax.numpy as jnp
from jax.experimental import pallas as pl
from jax.experimental.pallas import tpu as pltpu


def _kappa_kernel(logits_ref, targets_ref, sad_ref, hp_ref, *, hw, tp, needs_mask):
    # logits_ref : (1, C, TP)  native dtype   one sample, one pixel tile
    # targets_ref: (1, 1, TP)  int32
    # sad_ref    : (1, 1, 1)   float32  per-sample sum |true - pred| (resident)
    # hp_ref     : (1, C, 1)   float32  per-sample pred-class histogram (resident)
    c = logits_ref.shape[1]
    j = pl.program_id(1)

    @pl.when(j == 0)
    def _():
        sad_ref[...] = jnp.zeros_like(sad_ref)
        hp_ref[...] = jnp.zeros_like(hp_ref)

    logits = logits_ref[0]                                            # (C, TP)
    tgt = targets_ref[0]                                              # (1, TP)

    # argmax over the class (sublane) axis, lowest-index tie-break, built from
    # max + compare + min (robust lowering, matches torch/jnp argmax).
    cls_iota = jax.lax.broadcasted_iota(jnp.int32, logits.shape, 0)   # (C, TP)
    max_val = jnp.max(logits, axis=0, keepdims=True)                  # (1, TP)
    pred = jnp.min(jnp.where(logits == max_val, cls_iota, c),
                   axis=0, keepdims=True)                             # (1, TP)

    abs_diff = jnp.abs(tgt - pred).astype(jnp.float32)                # (1, TP)
    pred_hit = pred == cls_iota                                       # (C, TP)
    if needs_mask:
        lane = jax.lax.broadcasted_iota(jnp.int32, (1, tp), 1)        # (1, TP)
        valid = (j * tp + lane) < hw
        abs_diff = jnp.where(valid, abs_diff, 0.0)
        pred_hit = jnp.logical_and(pred_hit, valid)

    sad_ref[0] += jnp.sum(abs_diff, axis=1, keepdims=True)            # (1, 1)
    hp_ref[0] += jnp.sum(pred_hit.astype(jnp.float32),
                         axis=1, keepdims=True)                       # (C, 1)
    # TODO(synk): when C < 8 (f32) / 16 (bf16), pack 8//C (16//C) pixel groups
    # along sublanes to fill the vreg (perf-only, mostly a v7x win).


def _device_budgets():
    """(logits block byte budget, scoped vmem limit) from device VMEM size."""
    vmem = None
    try:
        vmem = getattr(pltpu.get_tpu_info(), "vmem_capacity_bytes", None)
    except Exception:
        vmem = None
    if vmem is not None and vmem >= (128 << 20):     # v5e / v6e: 128 MiB VMEM
        return 20 << 20, 64 << 20
    return 12 << 20, 48 << 20                        # v7x (64 MiB) / unknown


def _pick_tile(hw, c, itemsize, budget):
    """Largest pixel tile (multiple of 128) so one logits block fits budget."""
    sub = 8 * max(1, 4 // itemsize)                  # f32: 8, bf16: 16, int8: 32
    c_pad = ((c + sub - 1) // sub) * sub
    tp = max(128, (budget // (c_pad * itemsize)) // 128 * 128)
    hw_pad = ((hw + 127) // 128) * 128               # don't tile finer than needed
    return min(tp, hw_pad)


def cohen_kappa(y_preds, y_targets):
    """Pallas implementation of CohenKappa.forward (weights='linear')."""
    # TODO(synk): sklearn restricts the label set to classes present in the
    # data; this kernel uses the full 0..C-1 range (identical whenever every
    # class actually occurs in targets or predictions).
    N, C, H, W = y_preds.shape
    HW = H * W
    n_total = N * HW
    itemsize = y_preds.dtype.itemsize

    budget, vmem_limit = _device_budgets()
    TP = _pick_tile(HW, C, itemsize, budget)
    n_tiles = pl.cdiv(HW, TP)
    needs_mask = (HW % TP) != 0

    # Free reshapes only — no HBM transpose, no dtype cast of the logits.
    logits = y_preds.reshape(N, C, HW)
    targets = y_targets.reshape(N, 1, HW).astype(jnp.int32)

    sad_p, hp_p = pl.pallas_call(
        functools.partial(_kappa_kernel, hw=HW, tp=TP, needs_mask=needs_mask),
        out_shape=(jax.ShapeDtypeStruct((N, 1, 1), jnp.float32),
                   jax.ShapeDtypeStruct((N, C, 1), jnp.float32)),
        grid_spec=pltpu.PrefetchScalarGridSpec(
            num_scalar_prefetch=0,
            grid=(N, n_tiles),
            in_specs=[
                pl.BlockSpec((1, C, TP), lambda n, j: (n, 0, j)),
                pl.BlockSpec((1, 1, TP), lambda n, j: (n, 0, j)),
            ],
            out_specs=[
                pl.BlockSpec((1, 1, 1), lambda n, j: (n, 0, 0)),
                pl.BlockSpec((1, C, 1), lambda n, j: (n, 0, 0)),
            ],
        ),
        compiler_params=pltpu.CompilerParams(
            # Per-sample partial outputs -> batch axis can be megacore-parallel;
            # pixel-tile axis revisits the same output block -> arbitrary.
            dimension_semantics=("parallel", "arbitrary"),
            vmem_limit_bytes=vmem_limit,
        ),
        cost_estimate=pl.CostEstimate(
            flops=6 * C * n_total,
            transcendentals=0,
            bytes_accessed=C * n_total * itemsize + n_total * 4 + N * (C + 1) * 4,
        ),
    )(logits, targets)

    # Tiny epilogue in plain JAX (outside the HBM-bound streaming loop).
    sad = jnp.sum(sad_p)                                   # sum |true - pred|
    hp = jnp.sum(hp_p, axis=(0, 2))                        # (C,) pred histogram
    tflat = targets.reshape(-1)
    ht = jnp.sum((tflat[:, None] ==
                  jnp.arange(C, dtype=jnp.int32)[None, :]).astype(jnp.float32),
                 axis=0)                                   # (C,) true histogram
    idx = jnp.arange(C, dtype=jnp.float32)
    w = jnp.abs(idx[:, None] - idx[None, :])               # |i - j|
    den = (ht @ w @ hp) / jnp.float32(n_total)
    return 1.0 - sad / den


def _reference_cohen_kappa(y_preds, y_targets):
    """Pure-JAX reference mirroring sklearn cohen_kappa_score(weights='linear')."""
    C = y_preds.shape[1]
    y_pred = jnp.argmax(y_preds.astype(jnp.float32), axis=1).reshape(-1)
    y_true = y_targets.reshape(-1).astype(jnp.int32)
    n = y_true.shape[0]
    conf = jnp.zeros((C, C), jnp.float32).at[y_true, y_pred].add(1.0)
    sum0 = conf.sum(axis=0)                       # pred marginal (cols)
    sum1 = conf.sum(axis=1)                       # true marginal (rows)
    expected = jnp.outer(sum1, sum0) / n
    idx = jnp.arange(C, dtype=jnp.float32)
    w = jnp.abs(idx[:, None] - idx[None, :])
    k = jnp.sum(w * conf) / jnp.sum(w * expected)
    return 1.0 - k


if __name__ == "__main__":
    key = jax.random.PRNGKey(0)
    k_in, k_tgt = jax.random.split(key)

    N, C, H, W = 2, 4, 16, 16
    y_preds = jax.random.normal(k_in, (N, C, H, W), dtype=jnp.float32)
    y_targets = jax.random.randint(k_tgt, (N, H, W), 0, C, dtype=jnp.int32)

    # float32 logits
    out = jax.block_until_ready(cohen_kappa(y_preds, y_targets))
    ref = jax.block_until_ready(_reference_cohen_kappa(y_preds, y_targets))
    assert jnp.allclose(out, ref, rtol=1e-5, atol=1e-6), (out, ref)

    # bf16 logits streamed in native dtype (no wrapper cast; argmax in bf16)
    y_preds_bf16 = y_preds.astype(jnp.bfloat16)
    out_bf = jax.block_until_ready(cohen_kappa(y_preds_bf16, y_targets))
    ref_bf = jax.block_until_ready(_reference_cohen_kappa(y_preds_bf16, y_targets))
    assert jnp.allclose(out_bf, ref_bf, rtol=1e-5, atol=1e-6), (out_bf, ref_bf)

    print("KERNEL_OK")
</pallas_src>

<mosaic_0001>
module attributes {stable_mosaic.version = 11 : i64} {
  func.func @_kappa_kernel(%arg0: i32, %arg1: i32, %arg2: memref<1x4x256xf32, #tpu.memory_space<vmem>>, %arg3: memref<1x1x256xi32, #tpu.memory_space<vmem>>, %arg4: memref<1x1x1xf32, #tpu.memory_space<vmem>>, %arg5: memref<1x4x1xf32, #tpu.memory_space<vmem>>) attributes {dimension_semantics = [#tpu.dimension_semantics<parallel>, #tpu.dimension_semantics<arbitrary>], iteration_bounds = array<i64: 2, 1>, scalar_prefetch = 0 : i64, scratch_operands = 0 : i64, tpu.core_type = #tpu.core_type<tc>, window_params = [{transform_indices = @transform_0, window_bounds = array<i64: 1, 4, 256>}, {transform_indices = @transform_1, window_bounds = array<i64: 1, 1, 256>}, {transform_indices = @transform_2, window_bounds = array<i64: 1, 1, 1>}, {transform_indices = @transform_3, window_bounds = array<i64: 1, 4, 1>}]} {
    %c0_i32 = arith.constant 0 : i32
    %0 = arith.cmpi eq, %arg1, %c0_i32 : i32
    %1 = arith.extui %0 : i1 to i32
    %c0_i32_0 = arith.constant 0 : i32
    %2 = arith.cmpi ne, %1, %c0_i32_0 : i32
    scf.if %2 {
      %cst_21 = arith.constant 0.000000e+00 : f32
      %39 = vector.broadcast %cst_21 : f32 to vector<1x1x1xf32>
      %c0_22 = arith.constant 0 : index
      %c0_23 = arith.constant 0 : index
      %c0_24 = arith.constant 0 : index
      %40 = vector.load %arg4[%c0_22, %c0_23, %c0_24] : memref<1x1x1xf32, #tpu.memory_space<vmem>>, vector<1x1x1xf32>
      tpu.vector_store %arg4[%c0_22, %c0_23, %c0_24], %39 {strides = array<i32>} : memref<1x1x1xf32, #tpu.memory_space<vmem>>, vector<1x1x1xf32>,
      %cst_25 = arith.constant 0.000000e+00 : f32
      %41 = vector.broadcast %cst_25 : f32 to vector<1x4x1xf32>
      %c0_26 = arith.constant 0 : index
      %c0_27 = arith.constant 0 : index
      %c0_28 = arith.constant 0 : index
      %42 = vector.load %arg5[%c0_26, %c0_27, %c0_28] : memref<1x4x1xf32, #tpu.memory_space<vmem>>, vector<1x4x1xf32>
      tpu.vector_store %arg5[%c0_26, %c0_27, %c0_28], %41 {strides = array<i32>} : memref<1x4x1xf32, #tpu.memory_space<vmem>>, vector<1x4x1xf32>,
    } else {
    }
    %c0 = arith.constant 0 : index
    %c0_1 = arith.constant 0 : index
    %c0_2 = arith.constant 0 : index
    %3 = vector.load %arg2[%c0, %c0_1, %c0_2] : memref<1x4x256xf32, #tpu.memory_space<vmem>>, vector<1x4x256xf32>
    %4 = vector.shape_cast %3 : vector<1x4x256xf32> to vector<4x256xf32>
    %c0_3 = arith.constant 0 : index
    %c0_4 = arith.constant 0 : index
    %c0_5 = arith.constant 0 : index
    %5 = vector.load %arg3[%c0_3, %c0_4, %c0_5] : memref<1x1x256xi32, #tpu.memory_space<vmem>>, vector<1x1x256xi32>
    %6 = vector.shape_cast %5 : vector<1x1x256xi32> to vector<1x256xi32>
    %7 = tpu.iota {dimensions = array<i32: 0>} : vector<4x256xi32>
    %cst = arith.constant dense<0xFF800000> : vector<256xf32>
    %8 = vector.multi_reduction <maximumf>, %4, %cst [0] : vector<4x256xf32> to vector<256xf32>
    %9 = vector.shape_cast %8 : vector<256xf32> to vector<1x256xf32>
    %10 = vector.broadcast %9 : vector<1x256xf32> to vector<4x256xf32>
    %11 = arith.cmpf oeq, %4, %10 : vector<4x256xf32>
    %c4_i32 = arith.constant 4 : i32
    %12 = vector.broadcast %c4_i32 : i32 to vector<4x256xi32>
    %13 = arith.select %11, %7, %12 : vector<4x256xi1>, vector<4x256xi32>
    %cst_6 = arith.constant dense<2147483647> : vector<256xi32>
    %14 = vector.multi_reduction <minsi>, %13, %cst_6 [0] : vector<4x256xi32> to vector<256xi32>
    %15 = vector.shape_cast %14 : vector<256xi32> to vector<1x256xi32>
    %16 = arith.subi %6, %15 : vector<1x256xi32>
    %17 = math.absi %16 : vector<1x256xi32>
    %18 = arith.sitofp %17 : vector<1x256xi32> to vector<1x256xf32>
    %19 = vector.broadcast %15 : vector<1x256xi32> to vector<4x256xi32>
    %20 = arith.cmpi eq, %19, %7 : vector<4x256xi32>
    %c0_7 = arith.constant 0 : index
    %c0_8 = arith.constant 0 : index
    %c0_9 = arith.constant 0 : index
    %21 = vector.load %arg4[%c0_7, %c0_8, %c0_9] : memref<1x1x1xf32, #tpu.memory_space<vmem>>, vector<1x1x1xf32>
    %22 = vector.shape_cast %21 : vector<1x1x1xf32> to vector<1x1xf32>
    %cst_10 = arith.constant dense<0.000000e+00> : vector<1xf32>
    %23 = vector.multi_reduction <add>, %18, %cst_10 [1] : vector<1x256xf32> to vector<1xf32>
    %24 = vector.shape_cast %23 : vector<1xf32> to vector<1x1xf32>
    %25 = arith.addf %22, %24 : vector<1x1xf32>
    %c0_11 = arith.constant 0 : index
    %c0_12 = arith.constant 0 : index
    %c0_13 = arith.constant 0 : index
    %26 = vector.load %arg4[%c0_11, %c0_12, %c0_13] : memref<1x1x1xf32, #tpu.memory_space<vmem>>, vector<1x1x1xf32>
    %27 = vector.shape_cast %26 : vector<1x1x1xf32> to vector<1x1xf32>
    %28 = vector.shape_cast %25 : vector<1x1xf32> to vector<1x1x1xf32>
    tpu.vector_store %arg4[%c0_11, %c0_12, %c0_13], %28 {strides = array<i32>} : memref<1x1x1xf32, #tpu.memory_space<vmem>>, vector<1x1x1xf32>,
    %c0_14 = arith.constant 0 : index
    %c0_15 = arith.constant 0 : index
    %c0_16 = arith.constant 0 : index
    %29 = vector.load %arg5[%c0_14, %c0_15, %c0_16] : memref<1x4x1xf32, #tpu.memory_space<vmem>>, vector<1x4x1xf32>
    %30 = vector.shape_cast %29 : vector<1x4x1xf32> to vector<4x1xf32>
    %31 = arith.extui %20 : vector<4x256xi1> to vector<4x256xi32>
    %32 = arith.sitofp %31 : vector<4x256xi32> to vector<4x256xf32>
    %cst_17 = arith.constant dense<0.000000e+00> : vector<4xf32>
    %33 = vector.multi_reduction <add>, %32, %cst_17 [1] : vector<4x256xf32> to vector<4xf32>
    %34 = vector.shape_cast %33 : vector<4xf32> to vector<4x1xf32>
    %35 = arith.addf %30, %34 : vector<4x1xf32>
    %c0_18 = arith.constant 0 : index
    %c0_19 = arith.constant 0 : index
    %c0_20 = arith.constant 0 : index
    %36 = vector.load %arg5[%c0_18, %c0_19, %c0_20] : memref<1x4x1xf32, #tpu.memory_space<vmem>>, vector<1x4x1xf32>
    %37 = vector.shape_cast %36 : vector<1x4x1xf32> to vector<4x1xf32>
    %38 = vector.shape_cast %35 : vector<4x1xf32> to vector<1x4x1xf32>
    tpu.vector_store %arg5[%c0_18, %c0_19, %c0_20], %38 {strides = array<i32>} : memref<1x4x1xf32, #tpu.memory_space<vmem>>, vector<1x4x1xf32>,
    return
  }
  func.func @transform_0(%arg0: i32, %arg1: i32) -> (i32, i32, i32) {
    %c0_i32 = arith.constant 0 : i32
    %c0_i32_0 = arith.constant 0 : i32
    return %arg0, %c0_i32, %arg1 : i32, i32, i32
  }
  func.func @transform_1(%arg0: i32, %arg1: i32) -> (i32, i32, i32) {
    %c0_i32 = arith.constant 0 : i32
    %c0_i32_0 = arith.constant 0 : i32
    return %arg0, %c0_i32, %arg1 : i32, i32, i32
  }
  func.func @transform_2(%arg0: i32, %arg1: i32) -> (i32, i32, i32) {
    %c0_i32 = arith.constant 0 : i32
    %c0_i32_0 = arith.constant 0 : i32
    %c0_i32_1 = arith.constant 0 : i32
    return %arg0, %c0_i32, %c0_i32_0 : i32, i32, i32
  }
  func.func @transform_3(%arg0: i32, %arg1: i32) -> (i32, i32, i32) {
    %c0_i32 = arith.constant 0 : i32
    %c0_i32_0 = arith.constant 0 : i32
    %c0_i32_1 = arith.constant 0 : i32
    return %arg0, %c0_i32, %c0_i32_0 : i32, i32, i32
  }
}

</mosaic_0001>

<bundles_post_ra>
// kernel: tpu_custom_call.1
= control target key start
LH: loop header
LB: loop body
LE: loop exit
PB: predicated region body
PF: predicated region fallthrough
CT: control target
= control target key end

     0   :  { %9 = vsyncpa [#allocation3], 0  ;;  %s922_s0 = inlined_call_operand.hbm [shape: f32[2,4,256], index: 0, kind: input, shape index: {}]   ;;  %s923_s1 = inlined_call_operand.hbm [shape: s32[2,1,256], index: 1, kind: input, shape index: {}]   ;;  %s924_s2 = inlined_call_operand.vmem [shape: f32[2,1,1], index: 2, kind: output, shape index: {0}]   ;;  %s925_s3 = inlined_call_operand.vmem [shape: f32[2,4,1], index: 3, kind: output, shape index: {1}]  }
   0x1   :  { %11 = vsyncpa [#allocation3 + $0x1], 0 }
   0x2   :  { %12 = vsyncpa [#allocation5], 0 }
   0x3   :  { %14 = vsyncpa [#allocation5 + $0x1], 0  ;;  %s729_s12 = smov 0   ;;  %s731_s13 = smov 0  }
   0x4   :  { %s733_s14 = smov 0   ;;  %s735_s15 = smov 0  }
   0x5   :  { %s737_s16 = smov 0   ;;  %s739_s17 = smov 0  }
   0x6 LB: > { %s503_s18 = sadd.s32 4294967295, %s702_s17   ;;  %s32_s19 = sadd.s32 1, %s698_s16  ;;  %s702_s17 = sphi %s739_s17, %s20_s17   ;;  %s698_s16 = sphi %s737_s16, %s939_s16   ;;  %s694_s15 = sphi %s735_s15, %s938_s15   ;;  %s690_s14 = sphi %s733_s14, %s937_s14   ;;  %s686_s13 = sphi %s731_s13, %s936_s13   ;;  %s682_s12 = sphi %s729_s12, %s935_s12  }
   0x7   : > { %p34_p0 = scmp.ge.s32.totalorder %s32_s19, 2  ;;  %s41_s20 = sadd.s32 1, %s690_s14 }
   0x8   : > { %p48_p1 = scmp.ne.s32.totalorder %s690_s14, %s686_s13  ;;  %p49_p2 = scmp.eq.s32.totalorder %s702_s17, 0 }
   0x9   : > { %s941_s19 = smov (%p34_p0, %s32_s19), 0  ;;  %p54_p4 = scmp.ne.s32.totalorder %s686_s13, %s682_s12 }
   0xa   : > { %p765_p3 = por %p49_p2, %p48_p1  ;;  %s36_s22 = ssub.s32 %s698_s16, %s941_s19 }
   0xb   : > { %p55_p5 = scmp.eq.s32.totalorder %s503_s18, 0  ;;  %p39_p6 = scmp.eq.s32.totalorder %s36_s22, 0 }
   0xc   : > { %p535_p8 = scmp.lt.s32.totalorder %s702_s17, 2  ;;  %s781_s25 = sand.u32 1, %s690_s14  }
   0xd   : > { %p772_p7 = por %p55_p5, %p54_p4  ;;  %s522_s26 = sshll.u32 %s698_s16, 7 }
   0xe   : > { %s778_s24 = scalar_select %p39_p6, %s690_s14, %s41_s20  }
   0xf   : > { %s928_s23 = scalar_select %p772_p7, 1, 0 }
  0x10   : > { %s507_s27 = sshll.u32 %s781_s25, 3  ;;  %s788_s30 = scalar_lea.hbm %s922_s0, %s522_s26 }
  0x11   : > { %s162_s4 = scalar_lea.vmem [#allocation2], %s507_s27  ;;  %p792_p9 = pnand %p535_p8, %p765_p3 }
  0x12   : > { %s172_s5 = sshll.u32 %s162_s4, 4  ;;  %s159_s7 = scalar_lea.sflag [#allocation3], %s781_s25  ;;  %s796_s5 = int_to_ptr.vmem [resolvable:$true] %s172_s5 }
  0x13   : > { %s588_s8 = scalar_lea.hbm %s788_s30, 128  ;;  %p590_p13 = pneg %p792_p9 }
  0x14   : > { %p589_p12 = scmp.ne.s32.totalorder %s788_s30, %s588_s8  ;;  %s593_s11 = scalar_lea.hbm %s922_s0, 256 }
  0x15   : > { %p594_p2 = scmp.lt.u32.totalorder %s788_s30, %s922_s0  ;;  %p595_p3 = scmp.lt.u32.totalorder %s593_s11, %s588_s8 }
  0x16   : > { %p591_p0 = pnand %p590_p13, %p589_p12  ;;  %p597_p5 = scmp.lt.u32.totalorder %s588_s8, %s788_s30 }
  0x17   : > { %p596_p4 = por %p595_p3, %p594_p2 }
  0x18   : > { %p592_p1 = pneg %p591_p0 }
  0x19   : > { %p598_p6 = por %p597_p5, %p596_p4 }
  0x1b   : > { %p599_p8 = pnand %p598_p6, %p592_p1 }
  0x1d   : > { %602 = shalt.err (!%p599_p8)
}
  0x1e   : > { %s603_s20 = scalar_lea.vmem %s796_s5, 128  ;;  %s704_s21 = smov [#allocation2]  }
  0x1f   : > { %p604_p12 = scmp.ne.s32.totalorder %s796_s5, %s603_s20  ;;  %s608_s22 = sshll.u32 %s704_s21, 4  ;;  %s609_s22 = int_to_ptr.vmem [resolvable:$false] %s608_s22 }
  0x20   : > { %s610_s26 = scalar_lea.vmem %s609_s22, 256  ;;  %p611_p11 = scmp.lt.s32.totalorder %s796_s5, %s609_s22 }
  0x21   : > { %p606_p0 = pnand %p604_p12, %p590_p13  ;;  %p612_p2 = scmp.lt.s32.totalorder %s610_s26, %s603_s20 }
  0x23   : > { %p607_p10 = pneg %p606_p0  ;;  %p613_p3 = por %p612_p2, %p611_p11 }
  0x25   : > { %p614_p4 = pnand %p613_p3, %p607_p10 }
  0x27   : > { %617 = shalt.err (!%p614_p4)
}
  0x28   : > { %531 = dma.hbm_to_vmem [thread:$0]  (!%p792_p9), %s788_s30, 128, %s796_s5, %s159_s7  }
  0x29   : > { %p930_p1 = scmp.lt.s32.totalorder %s702_s17, 3  ;;  %p931_p5 = scmp.ge.s32.totalorder %s702_s17, 1 }
  0x2a   : > { %s510_s28 = sshll.u32 %s781_s25, 1  ;;  %s523_s29 = sshll.u32 %s698_s16, 5 }
  0x2b   : > { %p830_p6 = pnand %p931_p5, %p930_p1  ;;  %s839_s9 = scalar_lea.hbm %s923_s1, %s523_s29 }
  0x2c   : > { %s183_s10 = scalar_lea.vmem [#allocation4], %s510_s28  ;;  %s180_s30 = scalar_lea.sflag [#allocation5], %s781_s25 }
  0x2d   : > { %s932_s27 = scalar_select %p830_p6, 1, 0 }
  0x2e   : > { %s193_s11 = sshll.u32 %s183_s10, 4  ;;  %s618_s5 = scalar_lea.hbm %s839_s9, 32  ;;  %s194_s11 = int_to_ptr.vmem [resolvable:$true] %s193_s11 }
  0x2f   : > { %p619_p10 = scmp.ne.s32.totalorder %s839_s9, %s618_s5  ;;  %s623_s18 = scalar_lea.hbm %s923_s1, 64 }
  0x30   : > { %p624_p12 = scmp.lt.u32.totalorder %s839_s9, %s923_s1  ;;  %p625_p0 = scmp.lt.u32.totalorder %s623_s18, %s618_s5 }
  0x31   : > { %p621_p11 = pnand %p619_p10, %p590_p13  ;;  %p627_p3 = scmp.lt.u32.totalorder %s618_s5, %s839_s9 }
  0x32   : > { %p626_p2 = por %p625_p0, %p624_p12 }
  0x33   : > { %p622_p8 = pneg %p621_p11 }
  0x34   : > { %p628_p4 = por %p627_p3, %p626_p2 }
  0x36   : > { %p629_p1 = pnand %p628_p4, %p622_p8 }
  0x38   : > { %632 = shalt.err (!%p629_p1)
}
  0x39   : > { %s633_s25 = scalar_lea.vmem %s194_s11, 32  ;;  %s705_s22 = smov [#allocation4]  }
  0x3a   : > { %p634_p5 = scmp.ne.s32.totalorder %s194_s11, %s633_s25  ;;  %s638_s26 = sshll.u32 %s705_s22, 4  ;;  %s639_s26 = int_to_ptr.vmem [resolvable:$false] %s638_s26 }
  0x3b   : > { %s640_s28 = scalar_lea.vmem %s639_s26, 64  ;;  %p641_p7 = scmp.lt.s32.totalorder %s194_s11, %s639_s26 }
  0x3c   : > { %p636_p10 = pnand %p634_p5, %p590_p13  ;;  %p642_p6 = scmp.lt.s32.totalorder %s640_s28, %s633_s25 }
  0x3e   : > { %p637_p11 = pneg %p636_p10  ;;  %p643_p0 = por %p642_p6, %p641_p7 }
  0x40   : > { %p644_p12 = pnand %p643_p0, %p637_p11 }
  0x42   : > { %647 = shalt.err (!%p644_p12)
}
  0x43   : > { %534 = dma.hbm_to_vmem [thread:$0]  (!%p792_p9), %s839_s9, 32, %s194_s11, %s180_s30  }
  0x44   : > { %p933_p8 = scmp.ne.s32.totalorder %s932_s27, 0 }
  0x45   : > { %s204_s29 = sand.u32 (!%p933_p8), 1, %s686_s13   ;;  %p934_p13 = scmp.ne.s32.totalorder (!%p933_p8), %s928_s23, 0 }
  0x46   : > { %202 = sbr.rel (%p933_p8) target bundleno = 284 (0x11c), region = 28  ;;  %s514_s4 = sshll.u32 (!%p933_p8), %s204_s29, 3 }
  0x47   : > { %s205_s8 = scalar_lea.sflag (!%p933_p8), [#allocation3], %s204_s29  ;;  %s208_s10 = scalar_lea.vmem (!%p933_p8), [#allocation2], %s514_s4 }
  0x4d   : > { %673 = dma.done.wait (%p934_p13), %s205_s8, 128  }
  0x4e   : > { %675 = vsyncadd (%p934_p13), %s205_s8, 4294967168  ;;  %s515_s5 = sshll.u32 %s204_s29, 1  ;;  %s214_s7 = scalar_lea.sflag [#allocation5], %s204_s29 }
  0x4f   : > { %s868_s6 = scalar_lea.vmem [#allocation4], %s515_s5 }
  0x50   : > { %677 = dma.done.wait (%p934_p13), %s214_s7, 32  }
  0x51   : > { %679 = vsyncadd (%p934_p13), %s214_s7, 4294967264  ;;  %p249_p7 = scmp.lt.s32.totalorder %s694_s15, 1  ;;  %vm260_vm0 = vcmask 0   ;;  %vm271_vm1 = vcmask 1043456   ;;  %v706_v0 = vmov 0.0   ;;  %v264_v1 = vld [vmem:[%s208_s10] sm:$0xff]  ;;  %v266_v5 = vlaneseq }
  0x52   : > { %v269_v2 = vcombine.high %v264_v1, %v264_v1  ;;  %v272_v3 = vsel %vm271_vm1, %v264_v1, -inf  ;;  %v707_v7 = vmov 839922192   ;;  %v708_v33 = vmov 1966171168  }
  0x53   : > { %s943_s15 = smov (!%p249_p7, %s694_s15), 1  ;;  %v273_v4 = vrot.slane %v272_v3, 4  ;;  %v292_v8 = vunpack.c.l.s4 %v707_v7  ;;  %v267_v13 = vshrl.u32 %v266_v5, 7  ;;  %v322_v34 = vunpack.c.l.s4 %v708_v33  ;;  %v265_v47 = vld [vmem:[%s868_s6] sm:$0x3] }
  0x54   : > { %s882_s11 = scalar_lea.vmem %s924_s2, %s943_s15  ;;  %v279_v6 = vsel %vm271_vm1, %v269_v2, -inf  ;;  %vm354_vm11 = vcmask 1040384   ;;  %s516_s23 = sshll.u32 %s943_s15, 2  ;;  %vm262_vm12 = vcmask 3072  }
  0x55   : > { %261 = vst.msk [vmem:[%s882_s11] sm:$0x1] %vm260_vm0, %v706_v0  ;;  %v274_v9 = vmax.f32 %v272_v3, %v273_v4  ;;  %v280_v10 = vrot.slane %v279_v6, 4  ;;  %v293_v14 = vunpack.c.0.s8 %v292_v8  ;;  %v323_v39 = vunpack.c.0.s8 %v322_v34  ;;  %s255_s18 = scalar_lea.vmem %s925_s3, %s516_s23 }
  0x56   : > { %v346_v51 = vsub.s32 0, %v267_v13  ;;  %v350_v53 = vsub.s32 1, %v267_v13  ;;  %263 = vst.msk [vmem:[%s255_s18] sm:$0xf] %vm262_vm12, %v706_v0 }
  0x57   : > { %v275_v11 = vrot.slane %v274_v9, 2  ;;  %v281_v12 = vmax.f32 %v279_v6, %v280_v10  ;;  %v296_v19 = vsub.s32 %v293_v14, %v267_v13  ;;  %v326_v43 = vsub.s32 %v323_v39, %v267_v13 }
  0x59   : > { %v276_v15 = vmax.f32 %v274_v9, %v275_v11  ;;  %v282_v16 = vrot.slane %v281_v12, 2  ;;  %v297_v23 = vrot.slane %v267_v13, %v296_v19 }
  0x5b   : > { %v277_v17 = vrot.slane %v276_v15, 1  ;;  %v283_v18 = vmax.f32 %v281_v12, %v282_v16 }
  0x5c   : > { %v342_v2 = vld [vmem:[%s882_s11] sm:$0x1] }
  0x5d   : > { %v278_v20 = vmax.f32 %v276_v15, %v277_v17  ;;  %v284_v21 = vrot.slane %v283_v18, 1  ;;  %v363_v5 = vld [vmem:[%s255_s18] sm:$0xf] }
  0x5f   : > { %v285_v22 = vmax.f32 %v283_v18, %v284_v21 }
  0x61   : > { %v288_v24 = vcombine.low %v278_v20, %v285_v22 }
  0x63   : > { %vm290_vm2 = vcmp.eq.f32.partialorder %v264_v1, %v288_v24 }
  0x64   : > { %v298_v25 = vsel %vm290_vm2, %v297_v23, 4 }
  0x65   : > { %v299_v26 = vcombine.high %v298_v25, %v298_v25  ;;  %v300_v27 = vsel %vm271_vm1, %v298_v25, 2147483647 }
  0x66   : > { %v301_v28 = vrot.slane %v300_v27, 4 }
  0x67   : > { %v310_v29 = vsel %vm271_vm1, %v299_v26, 2147483647 }
  0x68   : > { %vm302_vm3 = vcmp.lt.s32.totalorder %v300_v27, %v301_v28  ;;  %v311_v30 = vrot.slane %v310_v29, 4 }
  0x69   : > { %v303_v31 = vsel %vm302_vm3, %v300_v27, %v301_v28 }
  0x6a   : > { %v304_v32 = vrot.slane %v303_v31, 2  ;;  %vm312_vm4 = vcmp.lt.s32.totalorder %v310_v29, %v311_v30 }
  0x6b   : > { %v313_v35 = vsel %vm312_vm4, %v310_v29, %v311_v30 }
  0x6c   : > { %vm305_vm5 = vcmp.lt.s32.totalorder %v303_v31, %v304_v32  ;;  %v314_v36 = vrot.slane %v313_v35, 2 }
  0x6d   : > { %v306_v37 = vsel %vm305_vm5, %v303_v31, %v304_v32 }
  0x6e   : > { %v307_v38 = vrot.slane %v306_v37, 1  ;;  %vm315_vm6 = vcmp.lt.s32.totalorder %v313_v35, %v314_v36 }
  0x6f   : > { %v316_v40 = vsel %vm315_vm6, %v313_v35, %v314_v36 }
  0x70   : > { %vm308_vm7 = vcmp.lt.s32.totalorder %v306_v37, %v307_v38  ;;  %v317_v41 = vrot.slane %v316_v40, 1 }
  0x71   : > { %v309_v42 = vsel %vm308_vm7, %v306_v37, %v307_v38 }
  0x72   : > { %vm318_vm8 = vcmp.lt.s32.totalorder %v316_v40, %v317_v41  ;;  %vm340_vm9 = vcmp.eq.s32.totalorder %v309_v42, %v267_v13 }
  0x73   : > { %v319_v44 = vsel %vm318_vm8, %v316_v40, %v317_v41  ;;  %v518_v55 = vsel %vm340_vm9, 1.0, %v706_v0 }
  0x74   : > { %v320_v45 = vcombine.low %v309_v42, %v319_v44  ;;  %vm341_vm10 = vcmp.eq.s32.totalorder %v319_v44, %v267_v13  ;;  %v368_v61 = vsel %vm271_vm1, %v518_v55, 0.0 }
  0x75   : > { %v519_v56 = vsel %vm341_vm10, 1.0, %v706_v0 }
  0x76   : > { %v327_v46 = vrot.slane %v320_v45, %v326_v43  ;;  %v369_v62 = vsel %vm271_vm1, %v519_v56, 0.0 }
  0x77   : > { %v370_v1 = vadd.f32 %v369_v62, %v368_v61 }
  0x78   : > { %v334_v48 = vrot.slane %v327_v46, %v326_v43 }
  0x7a   : > { %v335_v49 = vsub.s32 %v265_v47, %v334_v48 }
  0x7c   : > { %v337_v50 = vsub.s32 0, %v335_v49 }
  0x7e   : > { %v517_v52 = vmin.u32 %v337_v50, %v335_v49 }
  0x80   : > { %v339_v54 = vcvt.s32.f32 %v517_v52 }
  0x82   : > { %v347_v57 = vrot.slane %v339_v54, %v346_v51  ;;  %v351_v58 = vrot.slane %v339_v54, %v350_v53 }
  0x84   : > { %v355_v59 = vsel %vm354_vm11, %v347_v57, 0.0  ;;  %v356_v60 = vsel %vm354_vm11, %v351_v58, 0.0 }
  0x85   : > { %v357_v63 = vadd.f32 %v356_v60, %v355_v59 }
  0x87   : > { %358 = vadd.xlane.f32.xlu0 %v357_v63 }
  0x8b   : > { %371 = vadd.xlane.f32.xlu0 %v370_v1 }
 0x114   : > { %v359_v3 = vpop.xlane.xlu0 %358 }
 0x115   : > { %v360_v4 = vadd.f32 %v359_v3, %v342_v2 }
 0x117   : > { %362 = vst.msk [vmem:[%s882_s11] sm:$0x1] %vm260_vm0, %v360_v4 }
 0x118   : > { %v372_v6 = vpop.xlane.xlu0 %371 }
 0x119   : > { %v373_v7 = vadd.f32 %v372_v6, %v363_v5 }
 0x11b   : > { %375 = vst.msk [vmem:[%s255_s18] sm:$0xf] %vm262_vm12, %v373_v7 }
 0x11c PF: > { %s20_s17 = sadd.s32 1, %s702_s17   ;;  %s935_s12 = smov %s686_s13 }
 0x11d   : > { %p17_p9 = scmp.ge.s32.totalorder %s20_s17, 4   ;;  %s936_s13 = smov %s690_s14 }
 0x11e   : > { %s937_s14 = smov %s778_s24  ;;  %s938_s15 = smov %s698_s16 }
 0x11f   : > { %s939_s16 = smov %s941_s19  ;;  %19 = sbr.rel (!%p17_p9) target bundleno = 6 (0x6), region = 97 }
 0x126   :  { %407 = vsyncpa [#allocation3], 1 }
 0x127   :  { %409 = vsyncpa [#allocation3 + $0x1], 1 }
 0x128   :  { %410 = vsyncpa [#allocation5], 1 }
 0x129   :  { %412 = vsyncpa [#allocation5 + $0x1], 1 }

</bundles_post_ra>
